<compile_context>
chip_gen: v5e
topology: v5e:2x2
jax: 0.10.0
libtpu: 0.0.40
codegen_flags: <defaults>
</compile_context>

<pallas_src>
import functools
import math

import jax
import jax.numpy as jnp
from jax import lax
from jax.experimental import pallas as pl
from jax.experimental.pallas import tpu as pltpu

_LN_EPS = 1e-5          # nn.LayerNorm default
_NEG_BIG = -1e30        # finite "minus infinity" for masking


def _attention_kernel(x_ref, pad_ref,
                      wq_ref, bq_ref, wk_ref, bk_ref, wv_ref, bv_ref,
                      wout_ref, bout_ref, gamma_ref, beta_ref,
                      o_ref, *scratch, group_heads, d_k, num_groups,
                      apply_mask, fast_math):
    g = pl.program_id(1)

    x = x_ref[0]                                   # (S, D) f32
    S = x.shape[0]

    mm_dtype = jnp.bfloat16 if fast_math else jnp.float32

    def mm(a, b):
        return jnp.dot(a, b, preferred_element_type=jnp.float32)

    # Group-wide projections: (S, D) @ (D, G*d_k) + (1, G*d_k).  Weights are
    # already bf16 in fast_math mode; x is cast once per grid step.
    xw = x.astype(mm_dtype)
    q = mm(xw, wq_ref[0]) + bq_ref[0]              # (S, Gd) f32 (scale folded in)
    k = mm(xw, wk_ref[0]) + bk_ref[0]
    v = mm(xw, wv_ref[0]) + bv_ref[0]

    bias = None
    if apply_mask:
        mask_ref = scratch[0]

        @pl.when(g == 0)
        def _():
            # Combined causal + padding *additive* bias, built once per batch
            # step and reused by every head of every group.
            row = lax.broadcasted_iota(jnp.int32, (S, S), 0)
            col = lax.broadcasted_iota(jnp.int32, (S, S), 1)
            causal = jnp.where(col <= row, 0.0, _NEG_BIG).astype(jnp.float32)
            mask_ref[...] = causal + pad_ref[0]    # (S, S) + (1, S) broadcast

        bias = mask_ref[...]

    # Cast q/k/v once (no-ops in exact mode).
    q = q.astype(mm_dtype)
    k = k.astype(mm_dtype)
    v = v.astype(mm_dtype)

    nt_dims = (((1,), (1,)), ((), ()))             # contract last dims, no batch

    head_outs = []
    for hh in range(group_heads):
        sl = slice(hh * d_k, (hh + 1) * d_k)
        # Scores: NT matmul, no explicit transpose; q already scaled.
        s = lax.dot_general(q[:, sl], k[:, sl], nt_dims,
                            preferred_element_type=jnp.float32)   # (S, S) f32
        if apply_mask:
            s = s + bias
        # Softmax over keys in f32 (v5e has no bf16 VPU/EUP).
        s = s - jnp.max(s, axis=-1, keepdims=True)
        p = jnp.exp(s)
        denom = jnp.sum(p, axis=-1, keepdims=True)
        p = p * pl.reciprocal(denom, approx=fast_math)
        head_outs.append(mm(p.astype(mm_dtype), v[:, sl]))        # (S, d_k)

    if group_heads == 1:
        attn = head_outs[0]
    else:
        attn = jnp.concatenate(head_outs, axis=-1)                # (S, Gd)

    # Wide output projection: contracts the full group width G*d_k.
    partial = mm(attn.astype(mm_dtype), wout_ref[0])              # (S, D) f32

    # Accumulate straight into the resident output block (no acc scratch).
    @pl.when(g == 0)
    def _():
        o_ref[0] = partial

    @pl.when(g != 0)
    def _():
        o_ref[0] = o_ref[0] + partial

    @pl.when(g == num_groups - 1)
    def _():
        res = o_ref[0] + bout_ref[...] + x         # + bias, dropout==id, +residual
        mean = jnp.mean(res, axis=-1, keepdims=True)
        var = jnp.mean((res - mean) ** 2, axis=-1, keepdims=True)
        normed = (res - mean) * lax.rsqrt(var + _LN_EPS)
        o_ref[0] = normed * gamma_ref[...] + beta_ref[...]


def _pack_grouped_params(params, heads, group_heads, fast_math):
    """Re-pack [in,out] weights into per-head-group blocks (once, host side).

    The 1/sqrt(d_k) score scale is folded into W_q / b_q.  In fast_math mode
    the matmul weights are pre-cast to bf16 (halves weight DMA / VMEM).
    """
    w_qkv = params["w_qkv"]                        # (D, 3D)
    b_qkv = params["b_qkv"]                        # (1, 3D)
    D = w_qkv.shape[0]
    d_k = D // heads
    num_groups = heads // group_heads
    gd = group_heads * d_k
    inv_scale = 1.0 / math.sqrt(float(d_k))

    def grp_w(w, scale=1.0):                       # (D, D) -> (NG, D, Gd)
        return (w * scale).reshape(D, num_groups, gd).transpose(1, 0, 2)

    def grp_b(b, scale=1.0):                       # (D,)  -> (NG, 1, Gd)
        return (b * scale).reshape(num_groups, 1, gd)

    b_flat = b_qkv[0]
    w_q = grp_w(w_qkv[:, :D], inv_scale)
    w_k = grp_w(w_qkv[:, D:2 * D])
    w_v = grp_w(w_qkv[:, 2 * D:])
    b_q = grp_b(b_flat[:D], inv_scale)
    b_k = grp_b(b_flat[D:2 * D])
    b_v = grp_b(b_flat[2 * D:])
    w_out = params["w_out"].reshape(num_groups, gd, D)   # (NG, Gd, D)

    if fast_math:
        w_q, w_k, w_v, w_out = (t.astype(jnp.bfloat16)
                                for t in (w_q, w_k, w_v, w_out))
    return w_q, b_q, w_k, b_k, w_v, b_v, w_out


def attention_forward(x, params, *, heads, apply_mask=False, pad_mask=None,
                      fast_math=False, target_lanes=128):
    """x: [B, S, D] float32.  pad_mask: optional [B, S] (1=keep, 0=pad)."""
    B, S, D = x.shape
    assert D % heads == 0, "d_model must be divisible by heads"
    d_k = D // heads

    # Group heads so the projection lane width is ~target_lanes (128 on v5e;
    # 256 would suit v6e/v7x MXUs) and divides `heads` evenly.
    group_heads = max(1, min(heads, target_lanes // max(d_k, 1)))
    while heads % group_heads:
        group_heads -= 1
    num_groups = heads // group_heads
    gd = group_heads * d_k

    # Padding mask as a precomputed additive bias (0 keep / -1e30 pad).
    if pad_mask is None:
        pad_bias = jnp.zeros((B, 1, S), dtype=jnp.float32)
    else:
        pad_bias = jnp.where(pad_mask.astype(bool), 0.0, _NEG_BIG)
        pad_bias = pad_bias.astype(jnp.float32).reshape(B, 1, S)

    w_q, b_q, w_k, b_k, w_v, b_v, w_out_g = _pack_grouped_params(
        params, heads, group_heads, fast_math)

    kernel = functools.partial(
        _attention_kernel, group_heads=group_heads, d_k=d_k,
        num_groups=num_groups, apply_mask=apply_mask, fast_math=fast_math)

    grp_w_spec = pl.BlockSpec((1, D, gd), lambda b, g: (g, 0, 0))
    grp_b_spec = pl.BlockSpec((1, 1, gd), lambda b, g: (g, 0, 0))
    row_spec = pl.BlockSpec((1, D), lambda b, g: (0, 0))

    scratch_shapes = [pltpu.VMEM((S, S), jnp.float32)] if apply_mask else []

    return pl.pallas_call(
        kernel,
        out_shape=jax.ShapeDtypeStruct((B, S, D), jnp.float32),
        grid=(B, num_groups),
        in_specs=[
            pl.BlockSpec((1, S, D), lambda b, g: (b, 0, 0)),       # x
            pl.BlockSpec((1, 1, S), lambda b, g: (b, 0, 0)),       # pad bias
            grp_w_spec, grp_b_spec,                                # W_q, b_q
            grp_w_spec, grp_b_spec,                                # W_k, b_k
            grp_w_spec, grp_b_spec,                                # W_v, b_v
            pl.BlockSpec((1, gd, D), lambda b, g: (g, 0, 0)),      # W_out (group)
            row_spec,                                              # b_out
            row_spec,                                              # gamma
            row_spec,                                              # beta
        ],
        out_specs=pl.BlockSpec((1, S, D), lambda b, g: (b, 0, 0)),
        scratch_shapes=scratch_shapes,
        compiler_params=pltpu.CompilerParams(
            dimension_semantics=("parallel", "arbitrary"),
            # 64 MiB: v7x physical ceiling; v5e/v6e have 128 MiB, so this is a
            # safe raise from the old 32 MiB cap.
            vmem_limit_bytes=64 * 1024 * 1024),
    )(x, pad_bias, w_q, b_q, w_k, b_k, w_v, b_v, w_out_g,
      params["b_out"], params["gamma"], params["beta"])


def _reference_forward(x, params, *, heads, apply_mask=False, pad_mask=None):
    """Pure-JAX reference matching the PyTorch forward (eval mode)."""
    B, S, D = x.shape
    d_k = D // heads
    qkv = x @ params["w_qkv"] + params["b_qkv"]
    q, k, v = qkv[..., :D], qkv[..., D:2 * D], qkv[..., 2 * D:]
    rs = lambda t: t.reshape(B, S, heads, d_k).transpose(0, 2, 1, 3)
    q, k, v = rs(q), rs(k), rs(v)
    A = jnp.einsum("bhqd,bhkd->bhqk", q, k) / jnp.sqrt(jnp.float32(d_k))
    if apply_mask:
        causal = jnp.tril(jnp.ones((S, S), dtype=bool))[None, None]
        if pad_mask is not None:
            final = jnp.logical_and(causal, pad_mask.astype(bool)[:, None, None, :])
        else:
            final = causal
        A = jnp.where(final, A, -jnp.inf)
    A = jax.nn.softmax(A, axis=-1)
    A = jnp.einsum("bhqk,bhkd->bhqd", A, v)
    A = A.transpose(0, 2, 1, 3).reshape(B, S, D)
    A = A @ params["w_out"] + params["b_out"]
    A = A + x
    mean = jnp.mean(A, axis=-1, keepdims=True)
    var = jnp.mean((A - mean) ** 2, axis=-1, keepdims=True)
    return (A - mean) / jnp.sqrt(var + _LN_EPS) * params["gamma"] + params["beta"]


if __name__ == "__main__":
    B, S, D, H = 2, 8, 32, 4

    key = jax.random.PRNGKey(0)
    k_x, k_wqkv, k_bqkv, k_wout, k_bout = jax.random.split(key, 5)

    x = jax.random.normal(k_x, (B, S, D), dtype=jnp.float32)

    params = {
        # stored already transposed to [in, out]
        "w_qkv": 0.05 * jax.random.normal(k_wqkv, (D, 3 * D), dtype=jnp.float32),
        "b_qkv": 0.01 * jax.random.normal(k_bqkv, (1, 3 * D), dtype=jnp.float32),
        "w_out": 0.05 * jax.random.normal(k_wout, (D, D), dtype=jnp.float32),
        "b_out": 0.01 * jax.random.normal(k_bout, (1, D), dtype=jnp.float32),
        "gamma": jnp.ones((1, D), dtype=jnp.float32),
        "beta": jnp.zeros((1, D), dtype=jnp.float32),
    }

    # 1) no mask, exact f32 path
    out = attention_forward(x, params, heads=H, apply_mask=False)
    out = jax.block_until_ready(out)
    ref = _reference_forward(x, params, heads=H, apply_mask=False)
    assert out.shape == (B, S, D)
    assert jnp.allclose(out, ref, atol=1e-4, rtol=1e-4), "mismatch (no mask)"

    # 2) causal + padding mask (padding at the tail so no row is fully masked)
    pad = jnp.array([[1] * S, [1] * (S - 2) + [0] * 2], dtype=jnp.float32)
    out_m = attention_forward(x, params, heads=H, apply_mask=True, pad_mask=pad)
    out_m = jax.block_until_ready(out_m)
    ref_m = _reference_forward(x, params, heads=H, apply_mask=True, pad_mask=pad)
    assert jnp.allclose(out_m, ref_m, atol=1e-4, rtol=1e-4), "mismatch (masked)"

    # 3) fast-math path (bf16 MXU operands + approx EUP reciprocal), loose tol
    out_f = attention_forward(x, params, heads=H, apply_mask=True, pad_mask=pad,
                              fast_math=True)
    out_f = jax.block_until_ready(out_f)
    assert jnp.allclose(out_f, ref_m, atol=5e-2, rtol=5e-2), "mismatch (fast_math)"

    print("KERNEL_OK")
</pallas_src>

<mosaic_0001>
module attributes {stable_mosaic.version = 11 : i64} {
  func.func @_attention_kernel(%arg0: i32, %arg1: i32, %arg2: memref<1x8x32xf32, #tpu.memory_space<vmem>>, %arg3: memref<1x1x8xf32, #tpu.memory_space<vmem>>, %arg4: memref<1x32x32xf32, #tpu.memory_space<vmem>>, %arg5: memref<1x1x32xf32, #tpu.memory_space<vmem>>, %arg6: memref<1x32x32xf32, #tpu.memory_space<vmem>>, %arg7: memref<1x1x32xf32, #tpu.memory_space<vmem>>, %arg8: memref<1x32x32xf32, #tpu.memory_space<vmem>>, %arg9: memref<1x1x32xf32, #tpu.memory_space<vmem>>, %arg10: memref<1x32x32xf32, #tpu.memory_space<vmem>>, %arg11: memref<1x32xf32, #tpu.memory_space<vmem>>, %arg12: memref<1x32xf32, #tpu.memory_space<vmem>>, %arg13: memref<1x32xf32, #tpu.memory_space<vmem>>, %arg14: memref<1x8x32xf32, #tpu.memory_space<vmem>>) attributes {dimension_semantics = [#tpu.dimension_semantics<parallel>, #tpu.dimension_semantics<arbitrary>], iteration_bounds = array<i64: 2, 1>, scalar_prefetch = 0 : i64, scratch_operands = 0 : i64, tpu.core_type = #tpu.core_type<tc>, window_params = [{transform_indices = @transform_0, window_bounds = array<i64: 1, 8, 32>}, {transform_indices = @transform_1, window_bounds = array<i64: 1, 1, 8>}, {transform_indices = @transform_2, window_bounds = array<i64: 1, 32, 32>}, {transform_indices = @transform_3, window_bounds = array<i64: 1, 1, 32>}, {transform_indices = @transform_4, window_bounds = array<i64: 1, 32, 32>}, {transform_indices = @transform_5, window_bounds = array<i64: 1, 1, 32>}, {transform_indices = @transform_6, window_bounds = array<i64: 1, 32, 32>}, {transform_indices = @transform_7, window_bounds = array<i64: 1, 1, 32>}, {transform_indices = @transform_8, window_bounds = array<i64: 1, 32, 32>}, {pipeline_mode = #tpu.pipeline_mode<synchronous>, transform_indices = @transform_9, window_bounds = array<i64: 1, 32>}, {pipeline_mode = #tpu.pipeline_mode<synchronous>, transform_indices = @transform_10, window_bounds = array<i64: 1, 32>}, {pipeline_mode = #tpu.pipeline_mode<synchronous>, transform_indices = @transform_11, window_bounds = array<i64: 1, 32>}, {transform_indices = @transform_12, window_bounds = array<i64: 1, 8, 32>}]} {
    %c0 = arith.constant 0 : index
    %c0_0 = arith.constant 0 : index
    %c0_1 = arith.constant 0 : index
    %0 = vector.load %arg2[%c0, %c0_0, %c0_1] : memref<1x8x32xf32, #tpu.memory_space<vmem>>, vector<1x8x32xf32>
    %1 = vector.shape_cast %0 : vector<1x8x32xf32> to vector<8x32xf32>
    %c0_2 = arith.constant 0 : index
    %c0_3 = arith.constant 0 : index
    %c0_4 = arith.constant 0 : index
    %2 = vector.load %arg4[%c0_2, %c0_3, %c0_4] : memref<1x32x32xf32, #tpu.memory_space<vmem>>, vector<1x32x32xf32>
    %3 = vector.shape_cast %2 : vector<1x32x32xf32> to vector<32x32xf32>
    %cst = arith.constant dense<0.000000e+00> : vector<8x32xf32>
    %4 = tpu.matmul %1, %3, %cst {dimension_numbers = #tpu.dot_dimension_numbers<[1], [0], [0], [1], [0, 0, 1, 1], [], []>} : vector<8x32xf32>, vector<32x32xf32>, vector<8x32xf32> -> vector<8x32xf32>
    %c0_5 = arith.constant 0 : index
    %c0_6 = arith.constant 0 : index
    %c0_7 = arith.constant 0 : index
    %5 = vector.load %arg5[%c0_5, %c0_6, %c0_7] : memref<1x1x32xf32, #tpu.memory_space<vmem>>, vector<1x1x32xf32>
    %6 = vector.shape_cast %5 : vector<1x1x32xf32> to vector<1x32xf32>
    %7 = vector.broadcast %6 : vector<1x32xf32> to vector<8x32xf32>
    %8 = arith.addf %4, %7 : vector<8x32xf32>
    %c0_8 = arith.constant 0 : index
    %c0_9 = arith.constant 0 : index
    %c0_10 = arith.constant 0 : index
    %9 = vector.load %arg6[%c0_8, %c0_9, %c0_10] : memref<1x32x32xf32, #tpu.memory_space<vmem>>, vector<1x32x32xf32>
    %10 = vector.shape_cast %9 : vector<1x32x32xf32> to vector<32x32xf32>
    %cst_11 = arith.constant dense<0.000000e+00> : vector<8x32xf32>
    %11 = tpu.matmul %1, %10, %cst_11 {dimension_numbers = #tpu.dot_dimension_numbers<[1], [0], [0], [1], [0, 0, 1, 1], [], []>} : vector<8x32xf32>, vector<32x32xf32>, vector<8x32xf32> -> vector<8x32xf32>
    %c0_12 = arith.constant 0 : index
    %c0_13 = arith.constant 0 : index
    %c0_14 = arith.constant 0 : index
    %12 = vector.load %arg7[%c0_12, %c0_13, %c0_14] : memref<1x1x32xf32, #tpu.memory_space<vmem>>, vector<1x1x32xf32>
    %13 = vector.shape_cast %12 : vector<1x1x32xf32> to vector<1x32xf32>
    %14 = vector.broadcast %13 : vector<1x32xf32> to vector<8x32xf32>
    %15 = arith.addf %11, %14 : vector<8x32xf32>
    %c0_15 = arith.constant 0 : index
    %c0_16 = arith.constant 0 : index
    %c0_17 = arith.constant 0 : index
    %16 = vector.load %arg8[%c0_15, %c0_16, %c0_17] : memref<1x32x32xf32, #tpu.memory_space<vmem>>, vector<1x32x32xf32>
    %17 = vector.shape_cast %16 : vector<1x32x32xf32> to vector<32x32xf32>
    %cst_18 = arith.constant dense<0.000000e+00> : vector<8x32xf32>
    %18 = tpu.matmul %1, %17, %cst_18 {dimension_numbers = #tpu.dot_dimension_numbers<[1], [0], [0], [1], [0, 0, 1, 1], [], []>} : vector<8x32xf32>, vector<32x32xf32>, vector<8x32xf32> -> vector<8x32xf32>
    %c0_19 = arith.constant 0 : index
    %c0_20 = arith.constant 0 : index
    %c0_21 = arith.constant 0 : index
    %19 = vector.load %arg9[%c0_19, %c0_20, %c0_21] : memref<1x1x32xf32, #tpu.memory_space<vmem>>, vector<1x1x32xf32>
    %20 = vector.shape_cast %19 : vector<1x1x32xf32> to vector<1x32xf32>
    %21 = vector.broadcast %20 : vector<1x32xf32> to vector<8x32xf32>
    %22 = arith.addf %18, %21 : vector<8x32xf32>
    %23 = vector.extract_strided_slice %8 {offsets = [0, 0], sizes = [8, 8], strides = [1, 1]} : vector<8x32xf32> to vector<8x8xf32>
    %24 = vector.extract_strided_slice %15 {offsets = [0, 0], sizes = [8, 8], strides = [1, 1]} : vector<8x32xf32> to vector<8x8xf32>
    %cst_22 = arith.constant dense<0.000000e+00> : vector<8x8xf32>
    %25 = tpu.matmul %23, %24, %cst_22 {dimension_numbers = #tpu.dot_dimension_numbers<[1], [1], [0], [0], [0, 0, 1, 0], [], []>} : vector<8x8xf32>, vector<8x8xf32>, vector<8x8xf32> -> vector<8x8xf32>
    %cst_23 = arith.constant dense<0xFF800000> : vector<8xf32>
    %26 = vector.multi_reduction <maximumf>, %25, %cst_23 [1] : vector<8x8xf32> to vector<8xf32>
    %27 = vector.shape_cast %26 : vector<8xf32> to vector<8x1xf32>
    %28 = vector.broadcast %27 : vector<8x1xf32> to vector<8x8xf32>
    %29 = arith.subf %25, %28 : vector<8x8xf32>
    %30 = math.exp %29 : vector<8x8xf32>
    %cst_24 = arith.constant dense<0.000000e+00> : vector<8xf32>
    %31 = vector.multi_reduction <add>, %30, %cst_24 [1] : vector<8x8xf32> to vector<8xf32>
    %32 = vector.shape_cast %31 : vector<8xf32> to vector<8x1xf32>
    %33 = tpu.reciprocal %32 : vector<8x1xf32> -> vector<8x1xf32>
    %34 = vector.broadcast %33 : vector<8x1xf32> to vector<8x8xf32>
    %35 = arith.mulf %30, %34 : vector<8x8xf32>
    %36 = vector.extract_strided_slice %22 {offsets = [0, 0], sizes = [8, 8], strides = [1, 1]} : vector<8x32xf32> to vector<8x8xf32>
    %cst_25 = arith.constant dense<0.000000e+00> : vector<8x8xf32>
    %37 = tpu.matmul %35, %36, %cst_25 {dimension_numbers = #tpu.dot_dimension_numbers<[1], [0], [0], [1], [0, 0, 1, 1], [], []>} : vector<8x8xf32>, vector<8x8xf32>, vector<8x8xf32> -> vector<8x8xf32>
    %38 = vector.extract_strided_slice %8 {offsets = [0, 8], sizes = [8, 8], strides = [1, 1]} : vector<8x32xf32> to vector<8x8xf32>
    %39 = vector.extract_strided_slice %15 {offsets = [0, 8], sizes = [8, 8], strides = [1, 1]} : vector<8x32xf32> to vector<8x8xf32>
    %cst_26 = arith.constant dense<0.000000e+00> : vector<8x8xf32>
    %40 = tpu.matmul %38, %39, %cst_26 {dimension_numbers = #tpu.dot_dimension_numbers<[1], [1], [0], [0], [0, 0, 1, 0], [], []>} : vector<8x8xf32>, vector<8x8xf32>, vector<8x8xf32> -> vector<8x8xf32>
    %cst_27 = arith.constant dense<0xFF800000> : vector<8xf32>
    %41 = vector.multi_reduction <maximumf>, %40, %cst_27 [1] : vector<8x8xf32> to vector<8xf32>
    %42 = vector.shape_cast %41 : vector<8xf32> to vector<8x1xf32>
    %43 = vector.broadcast %42 : vector<8x1xf32> to vector<8x8xf32>
    %44 = arith.subf %40, %43 : vector<8x8xf32>
    %45 = math.exp %44 : vector<8x8xf32>
    %cst_28 = arith.constant dense<0.000000e+00> : vector<8xf32>
    %46 = vector.multi_reduction <add>, %45, %cst_28 [1] : vector<8x8xf32> to vector<8xf32>
    %47 = vector.shape_cast %46 : vector<8xf32> to vector<8x1xf32>
    %48 = tpu.reciprocal %47 : vector<8x1xf32> -> vector<8x1xf32>
    %49 = vector.broadcast %48 : vector<8x1xf32> to vector<8x8xf32>
    %50 = arith.mulf %45, %49 : vector<8x8xf32>
    %51 = vector.extract_strided_slice %22 {offsets = [0, 8], sizes = [8, 8], strides = [1, 1]} : vector<8x32xf32> to vector<8x8xf32>
    %cst_29 = arith.constant dense<0.000000e+00> : vector<8x8xf32>
    %52 = tpu.matmul %50, %51, %cst_29 {dimension_numbers = #tpu.dot_dimension_numbers<[1], [0], [0], [1], [0, 0, 1, 1], [], []>} : vector<8x8xf32>, vector<8x8xf32>, vector<8x8xf32> -> vector<8x8xf32>
    %53 = vector.extract_strided_slice %8 {offsets = [0, 16], sizes = [8, 8], strides = [1, 1]} : vector<8x32xf32> to vector<8x8xf32>
    %54 = vector.extract_strided_slice %15 {offsets = [0, 16], sizes = [8, 8], strides = [1, 1]} : vector<8x32xf32> to vector<8x8xf32>
    %cst_30 = arith.constant dense<0.000000e+00> : vector<8x8xf32>
    %55 = tpu.matmul %53, %54, %cst_30 {dimension_numbers = #tpu.dot_dimension_numbers<[1], [1], [0], [0], [0, 0, 1, 0], [], []>} : vector<8x8xf32>, vector<8x8xf32>, vector<8x8xf32> -> vector<8x8xf32>
    %cst_31 = arith.constant dense<0xFF800000> : vector<8xf32>
    %56 = vector.multi_reduction <maximumf>, %55, %cst_31 [1] : vector<8x8xf32> to vector<8xf32>
    %57 = vector.shape_cast %56 : vector<8xf32> to vector<8x1xf32>
    %58 = vector.broadcast %57 : vector<8x1xf32> to vector<8x8xf32>
    %59 = arith.subf %55, %58 : vector<8x8xf32>
    %60 = math.exp %59 : vector<8x8xf32>
    %cst_32 = arith.constant dense<0.000000e+00> : vector<8xf32>
    %61 = vector.multi_reduction <add>, %60, %cst_32 [1] : vector<8x8xf32> to vector<8xf32>
    %62 = vector.shape_cast %61 : vector<8xf32> to vector<8x1xf32>
    %63 = tpu.reciprocal %62 : vector<8x1xf32> -> vector<8x1xf32>
    %64 = vector.broadcast %63 : vector<8x1xf32> to vector<8x8xf32>
    %65 = arith.mulf %60, %64 : vector<8x8xf32>
    %66 = vector.extract_strided_slice %22 {offsets = [0, 16], sizes = [8, 8], strides = [1, 1]} : vector<8x32xf32> to vector<8x8xf32>
    %cst_33 = arith.constant dense<0.000000e+00> : vector<8x8xf32>
    %67 = tpu.matmul %65, %66, %cst_33 {dimension_numbers = #tpu.dot_dimension_numbers<[1], [0], [0], [1], [0, 0, 1, 1], [], []>} : vector<8x8xf32>, vector<8x8xf32>, vector<8x8xf32> -> vector<8x8xf32>
    %68 = vector.extract_strided_slice %8 {offsets = [0, 24], sizes = [8, 8], strides = [1, 1]} : vector<8x32xf32> to vector<8x8xf32>
    %69 = vector.extract_strided_slice %15 {offsets = [0, 24], sizes = [8, 8], strides = [1, 1]} : vector<8x32xf32> to vector<8x8xf32>
    %cst_34 = arith.constant dense<0.000000e+00> : vector<8x8xf32>
    %70 = tpu.matmul %68, %69, %cst_34 {dimension_numbers = #tpu.dot_dimension_numbers<[1], [1], [0], [0], [0, 0, 1, 0], [], []>} : vector<8x8xf32>, vector<8x8xf32>, vector<8x8xf32> -> vector<8x8xf32>
    %cst_35 = arith.constant dense<0xFF800000> : vector<8xf32>
    %71 = vector.multi_reduction <maximumf>, %70, %cst_35 [1] : vector<8x8xf32> to vector<8xf32>
    %72 = vector.shape_cast %71 : vector<8xf32> to vector<8x1xf32>
    %73 = vector.broadcast %72 : vector<8x1xf32> to vector<8x8xf32>
    %74 = arith.subf %70, %73 : vector<8x8xf32>
    %75 = math.exp %74 : vector<8x8xf32>
    %cst_36 = arith.constant dense<0.000000e+00> : vector<8xf32>
    %76 = vector.multi_reduction <add>, %75, %cst_36 [1] : vector<8x8xf32> to vector<8xf32>
    %77 = vector.shape_cast %76 : vector<8xf32> to vector<8x1xf32>
    %78 = tpu.reciprocal %77 : vector<8x1xf32> -> vector<8x1xf32>
    %79 = vector.broadcast %78 : vector<8x1xf32> to vector<8x8xf32>
    %80 = arith.mulf %75, %79 : vector<8x8xf32>
    %81 = vector.extract_strided_slice %22 {offsets = [0, 24], sizes = [8, 8], strides = [1, 1]} : vector<8x32xf32> to vector<8x8xf32>
    %cst_37 = arith.constant dense<0.000000e+00> : vector<8x8xf32>
    %82 = tpu.matmul %80, %81, %cst_37 {dimension_numbers = #tpu.dot_dimension_numbers<[1], [0], [0], [1], [0, 0, 1, 1], [], []>} : vector<8x8xf32>, vector<8x8xf32>, vector<8x8xf32> -> vector<8x8xf32>
    %83 = tpu.concatenate %37, %52, %67, %82 in 1 : vector<8x8xf32>, vector<8x8xf32>, vector<8x8xf32>, vector<8x8xf32> -> vector<8x32xf32>
    %c0_38 = arith.constant 0 : index
    %c0_39 = arith.constant 0 : index
    %c0_40 = arith.constant 0 : index
    %84 = vector.load %arg10[%c0_38, %c0_39, %c0_40] : memref<1x32x32xf32, #tpu.memory_space<vmem>>, vector<1x32x32xf32>
    %85 = vector.shape_cast %84 : vector<1x32x32xf32> to vector<32x32xf32>
    %cst_41 = arith.constant dense<0.000000e+00> : vector<8x32xf32>
    %86 = tpu.matmul %83, %85, %cst_41 {dimension_numbers = #tpu.dot_dimension_numbers<[1], [0], [0], [1], [0, 0, 1, 1], [], []>} : vector<8x32xf32>, vector<32x32xf32>, vector<8x32xf32> -> vector<8x32xf32>
    %c0_i32 = arith.constant 0 : i32
    %87 = arith.cmpi eq, %arg1, %c0_i32 : i32
    %88 = arith.extui %87 : i1 to i32
    %c0_i32_42 = arith.constant 0 : i32
    %89 = arith.cmpi ne, %88, %c0_i32_42 : i32
    scf.if %89 {
      %c0_47 = arith.constant 0 : index
      %c0_48 = arith.constant 0 : index
      %c0_49 = arith.constant 0 : index
      %96 = vector.load %arg14[%c0_47, %c0_48, %c0_49] : memref<1x8x32xf32, #tpu.memory_space<vmem>>, vector<1x8x32xf32>
      %97 = vector.shape_cast %96 : vector<1x8x32xf32> to vector<8x32xf32>
      %98 = vector.shape_cast %86 : vector<8x32xf32> to vector<1x8x32xf32>
      tpu.vector_store %arg14[%c0_47, %c0_48, %c0_49], %98 {strides = array<i32>} : memref<1x8x32xf32, #tpu.memory_space<vmem>>, vector<1x8x32xf32>,
    } else {
    }
    %c0_i32_43 = arith.constant 0 : i32
    %90 = arith.cmpi ne, %arg1, %c0_i32_43 : i32
    %91 = arith.extui %90 : i1 to i32
    %c0_i32_44 = arith.constant 0 : i32
    %92 = arith.cmpi ne, %91, %c0_i32_44 : i32
    scf.if %92 {
      %c0_47 = arith.constant 0 : index
      %c0_48 = arith.constant 0 : index
      %c0_49 = arith.constant 0 : index
      %96 = vector.load %arg14[%c0_47, %c0_48, %c0_49] : memref<1x8x32xf32, #tpu.memory_space<vmem>>, vector<1x8x32xf32>
      %97 = vector.shape_cast %96 : vector<1x8x32xf32> to vector<8x32xf32>
      %98 = arith.addf %97, %86 : vector<8x32xf32>
      %c0_50 = arith.constant 0 : index
      %c0_51 = arith.constant 0 : index
      %c0_52 = arith.constant 0 : index
      %99 = vector.load %arg14[%c0_50, %c0_51, %c0_52] : memref<1x8x32xf32, #tpu.memory_space<vmem>>, vector<1x8x32xf32>
      %100 = vector.shape_cast %99 : vector<1x8x32xf32> to vector<8x32xf32>
      %101 = vector.shape_cast %98 : vector<8x32xf32> to vector<1x8x32xf32>
      tpu.vector_store %arg14[%c0_50, %c0_51, %c0_52], %101 {strides = array<i32>} : memref<1x8x32xf32, #tpu.memory_space<vmem>>, vector<1x8x32xf32>,
    } else {
    }
    %c0_i32_45 = arith.constant 0 : i32
    %93 = arith.cmpi eq, %arg1, %c0_i32_45 : i32
    %94 = arith.extui %93 : i1 to i32
    %c0_i32_46 = arith.constant 0 : i32
    %95 = arith.cmpi ne, %94, %c0_i32_46 : i32
    scf.if %95 {
      %c0_47 = arith.constant 0 : index
      %c0_48 = arith.constant 0 : index
      %c0_49 = arith.constant 0 : index
      %96 = vector.load %arg14[%c0_47, %c0_48, %c0_49] : memref<1x8x32xf32, #tpu.memory_space<vmem>>, vector<1x8x32xf32>
      %97 = vector.shape_cast %96 : vector<1x8x32xf32> to vector<8x32xf32>
      %c0_50 = arith.constant 0 : index
      %c0_51 = arith.constant 0 : index
      %98 = vector.load %arg11[%c0_50, %c0_51] : memref<1x32xf32, #tpu.memory_space<vmem>>, vector<1x32xf32>
      %99 = vector.broadcast %98 : vector<1x32xf32> to vector<8x32xf32>
      %100 = arith.addf %97, %99 : vector<8x32xf32>
      %101 = arith.addf %100, %1 : vector<8x32xf32>
      %cst_52 = arith.constant dense<0.000000e+00> : vector<8xf32>
      %102 = vector.multi_reduction <add>, %101, %cst_52 [1] : vector<8x32xf32> to vector<8xf32>
      %103 = vector.shape_cast %102 : vector<8xf32> to vector<8x1xf32>
      %cst_53 = arith.constant 3.200000e+01 : f32
      %104 = vector.broadcast %cst_53 : f32 to vector<8x1xf32>
      %105 = arith.divf %103, %104 : vector<8x1xf32>
      %106 = vector.broadcast %105 : vector<8x1xf32> to vector<8x32xf32>
      %107 = arith.subf %101, %106 : vector<8x32xf32>
      %108 = arith.mulf %107, %107 : vector<8x32xf32>
      %cst_54 = arith.constant dense<0.000000e+00> : vector<8xf32>
      %109 = vector.multi_reduction <add>, %108, %cst_54 [1] : vector<8x32xf32> to vector<8xf32>
      %110 = vector.shape_cast %109 : vector<8xf32> to vector<8x1xf32>
      %cst_55 = arith.constant 3.200000e+01 : f32
      %111 = vector.broadcast %cst_55 : f32 to vector<8x1xf32>
      %112 = arith.divf %110, %111 : vector<8x1xf32>
      %113 = vector.broadcast %105 : vector<8x1xf32> to vector<8x32xf32>
      %114 = arith.subf %101, %113 : vector<8x32xf32>
      %cst_56 = arith.constant 9.99999974E-6 : f32
      %115 = vector.broadcast %cst_56 : f32 to vector<8x1xf32>
      %116 = arith.addf %112, %115 : vector<8x1xf32>
      %117 = math.rsqrt %116 : vector<8x1xf32>
      %118 = vector.broadcast %117 : vector<8x1xf32> to vector<8x32xf32>
      %119 = arith.mulf %114, %118 : vector<8x32xf32>
      %c0_57 = arith.constant 0 : index
      %c0_58 = arith.constant 0 : index
      %120 = vector.load %arg12[%c0_57, %c0_58] : memref<1x32xf32, #tpu.memory_space<vmem>>, vector<1x32xf32>
      %121 = vector.broadcast %120 : vector<1x32xf32> to vector<8x32xf32>
      %122 = arith.mulf %119, %121 : vector<8x32xf32>
      %c0_59 = arith.constant 0 : index
      %c0_60 = arith.constant 0 : index
      %123 = vector.load %arg13[%c0_59, %c0_60] : memref<1x32xf32, #tpu.memory_space<vmem>>, vector<1x32xf32>
      %124 = vector.broadcast %123 : vector<1x32xf32> to vector<8x32xf32>
      %125 = arith.addf %122, %124 : vector<8x32xf32>
      %c0_61 = arith.constant 0 : index
      %c0_62 = arith.constant 0 : index
      %c0_63 = arith.constant 0 : index
      %126 = vector.load %arg14[%c0_61, %c0_62, %c0_63] : memref<1x8x32xf32, #tpu.memory_space<vmem>>, vector<1x8x32xf32>
      %127 = vector.shape_cast %126 : vector<1x8x32xf32> to vector<8x32xf32>
      %128 = vector.shape_cast %125 : vector<8x32xf32> to vector<1x8x32xf32>
      tpu.vector_store %arg14[%c0_61, %c0_62, %c0_63], %128 {strides = array<i32>} : memref<1x8x32xf32, #tpu.memory_space<vmem>>, vector<1x8x32xf32>,
    } else {
    }
    return
  }
  func.func @transform_0(%arg0: i32, %arg1: i32) -> (i32, i32, i32) {
    %c0_i32 = arith.constant 0 : i32
    %c0_i32_0 = arith.constant 0 : i32
    %c0_i32_1 = arith.constant 0 : i32
    return %arg0, %c0_i32, %c0_i32_0 : i32, i32, i32
  }
  func.func @transform_1(%arg0: i32, %arg1: i32) -> (i32, i32, i32) {
    %c0_i32 = arith.constant 0 : i32
    %c0_i32_0 = arith.constant 0 : i32
    %c0_i32_1 = arith.constant 0 : i32
    return %arg0, %c0_i32, %c0_i32_0 : i32, i32, i32
  }
  func.func @transform_2(%arg0: i32, %arg1: i32) -> (i32, i32, i32) {
    %c0_i32 = arith.constant 0 : i32
    %c0_i32_0 = arith.constant 0 : i32
    %c0_i32_1 = arith.constant 0 : i32
    return %arg1, %c0_i32, %c0_i32_0 : i32, i32, i32
  }
  func.func @transform_3(%arg0: i32, %arg1: i32) -> (i32, i32, i32) {
    %c0_i32 = arith.constant 0 : i32
    %c0_i32_0 = arith.constant 0 : i32
    %c0_i32_1 = arith.constant 0 : i32
    return %arg1, %c0_i32, %c0_i32_0 : i32, i32, i32
  }
  func.func @transform_4(%arg0: i32, %arg1: i32) -> (i32, i32, i32) {
    %c0_i32 = arith.constant 0 : i32
    %c0_i32_0 = arith.constant 0 : i32
    %c0_i32_1 = arith.constant 0 : i32
    return %arg1, %c0_i32, %c0_i32_0 : i32, i32, i32
  }
  func.func @transform_5(%arg0: i32, %arg1: i32) -> (i32, i32, i32) {
    %c0_i32 = arith.constant 0 : i32
    %c0_i32_0 = arith.constant 0 : i32
    %c0_i32_1 = arith.constant 0 : i32
    return %arg1, %c0_i32, %c0_i32_0 : i32, i32, i32
  }
  func.func @transform_6(%arg0: i32, %arg1: i32) -> (i32, i32, i32) {
    %c0_i32 = arith.constant 0 : i32
    %c0_i32_0 = arith.constant 0 : i32
    %c0_i32_1 = arith.constant 0 : i32
    return %arg1, %c0_i32, %c0_i32_0 : i32, i32, i32
  }
  func.func @transform_7(%arg0: i32, %arg1: i32) -> (i32, i32, i32) {
    %c0_i32 = arith.constant 0 : i32
    %c0_i32_0 = arith.constant 0 : i32
    %c0_i32_1 = arith.constant 0 : i32
    return %arg1, %c0_i32, %c0_i32_0 : i32, i32, i32
  }
  func.func @transform_8(%arg0: i32, %arg1: i32) -> (i32, i32, i32) {
    %c0_i32 = arith.constant 0 : i32
    %c0_i32_0 = arith.constant 0 : i32
    %c0_i32_1 = arith.constant 0 : i32
    return %arg1, %c0_i32, %c0_i32_0 : i32, i32, i32
  }
  func.func @transform_9(%arg0: i32, %arg1: i32) -> (i32, i32) {
    %c0_i32 = arith.constant 0 : i32
    %c0_i32_0 = arith.constant 0 : i32
    %c0_i32_1 = arith.constant 0 : i32
    return %c0_i32, %c0_i32_0 : i32, i32
  }
  func.func @transform_10(%arg0: i32, %arg1: i32) -> (i32, i32) {
    %c0_i32 = arith.constant 0 : i32
    %c0_i32_0 = arith.constant 0 : i32
    %c0_i32_1 = arith.constant 0 : i32
    return %c0_i32, %c0_i32_0 : i32, i32
  }
  func.func @transform_11(%arg0: i32, %arg1: i32) -> (i32, i32) {
    %c0_i32 = arith.constant 0 : i32
    %c0_i32_0 = arith.constant 0 : i32
    %c0_i32_1 = arith.constant 0 : i32
    return %c0_i32, %c0_i32_0 : i32, i32
  }
  func.func @transform_12(%arg0: i32, %arg1: i32) -> (i32, i32, i32) {
    %c0_i32 = arith.constant 0 : i32
    %c0_i32_0 = arith.constant 0 : i32
    %c0_i32_1 = arith.constant 0 : i32
    return %arg0, %c0_i32, %c0_i32_0 : i32, i32, i32
  }
}

</mosaic_0001>

<bundles_post_ra>
// kernel: tpu_custom_call.1
= control target key start
LH: loop header
LB: loop body
LE: loop exit
PB: predicated region body
PF: predicated region fallthrough
CT: control target
= control target key end

     0   :  { %s2124_s0 = inlined_call_operand.hbm [shape: f32[2,8,32], index: 0, kind: input, shape index: {}]   ;;  %s2125_s1 = inlined_call_operand.hbm [shape: f32[2,1,8], index: 1, kind: input, shape index: {}]   ;;  %s2126_s2 = inlined_call_operand.hbm [shape: f32[1,32,32], index: 2, kind: input, shape index: {}]   ;;  %s2127_s3 = inlined_call_operand.vmem [shape: f32[1,1,32], index: 3, kind: input, shape index: {}]   ;;  %s2128_s4 = inlined_call_operand.hbm [shape: f32[1,32,32], index: 4, kind: input, shape index: {}]   ;;  %s2129_s5 = inlined_call_operand.vmem [shape: f32[1,1,32], index: 5, kind: input, shape index: {}]   ;;  %s2130_s6 = inlined_call_operand.hbm [shape: f32[1,32,32], index: 6, kind: input, shape index: {}]   ;;  %s2131_s7 = inlined_call_operand.vmem [shape: f32[1,1,32], index: 7, kind: input, shape index: {}]   ;;  %s2132_s8 = inlined_call_operand.hbm [shape: f32[1,32,32], index: 8, kind: input, shape index: {}]   ;;  %s2133_s9 = inlined_call_operand.vmem [shape: f32[1,32], index: 9, kind: input, shape index: {}]   ;;  %s2134_s10 = inlined_call_operand.vmem [shape: f32[1,32], index: 10, kind: input, shape index: {}]   ;;  %s2135_s11 = inlined_call_operand.vmem [shape: f32[1,32], index: 11, kind: input, shape index: {}]   ;;  %s2136_s12 = inlined_call_operand.hbm [shape: f32[2,8,32], index: 12, kind: output, shape index: {}]  }
   0x1   :  { %2144 = sst [smem:[#allocation26_spill]] %s2126_s2 }
   0x2   :  { %2145 = sst [smem:[#allocation27_spill]] %s2128_s4 }
   0x3   :  { %2146 = sst [smem:[#allocation28_spill]] %s2130_s6 }
   0x4   :  { %2147 = sst [smem:[#allocation29_spill]] %s2132_s8 }
   0x5   :  { %2148 = sst [smem:[#allocation30_spill]] %s2134_s10 }
   0x6   :  { %2149 = sst [smem:[#allocation31_spill]] %s2135_s11 }
   0x7   :  { %2150 = sst [smem:[#allocation32_spill]] %s2136_s12 }
   0x8   :  { %17 = vsyncpa [#allocation3], 0 }
   0x9   :  { %19 = vsyncpa [#allocation3 + $0x1], 0 }
   0xa   :  { %20 = vsyncpa [#allocation6], 0 }
   0xb   :  { %22 = vsyncpa [#allocation6 + $0x1], 0 }
   0xc   :  { %23 = vsyncpa [#allocation9], 0 }
   0xd   :  { %24 = vsyncpa [#allocation12], 0 }
   0xe   :  { %25 = vsyncpa [#allocation4], 0 }
   0xf   :  { %27 = vsyncpa [#allocation4 + $0x1], 0  ;;  %s1858_s21 = smov 0   ;;  %s1860_s22 = smov 0  }
  0x10   :  { %s1862_s23 = smov 0   ;;  %s1864_s24 = smov 0  }
  0x11   :  { %s1866_s25 = smov 0   ;;  %s1868_s26 = smov 0  }
  0x12 LB: > { %2151 = sst [smem:[#allocation20_spill]] %s1758_s21  ;;  %s1889_s27 = sadd.s32 4294967295, %s1778_s26   ;;  %s1778_s26 = sphi %s1868_s26, %s33_s26   ;;  %s1774_s25 = sphi %s1866_s25, %s2180_s25   ;;  %s1770_s24 = sphi %s1864_s24, %s2179_s24   ;;  %s1766_s23 = sphi %s1862_s23, %s2178_s23   ;;  %s1762_s22 = sphi %s1860_s22, %s2177_s22   ;;  %s1758_s21 = sphi %s1858_s21, %s2176_s21  }
  0x13   : > { %2152 = sst [smem:[#allocation21_spill]] %s1766_s23  ;;  %p1319_p0 = scmp.ge.s32.totalorder %s1778_s26, 1 }
  0x14   : > { %p66_p1 = scmp.eq.s32.totalorder %s1889_s27, 0  ;;  %p373_p2 = scmp.lt.s32.totalorder %s1778_s26, 3 }
  0x15   : > { %s2153_s2 = sld [smem:[#allocation26_spill]]  ;;  %s1780_s14 = smov [#allocation7]  }
  0x16   : > { %p1897_p3 = pnand %p1319_p0, %p373_p2  ;;  %s389_s15 = sshll.u32 %s1780_s14, 4  ;;  %s390_s15 = int_to_ptr.vmem [resolvable:$true] %s389_s15 }
  0x17   : > { %p1327_p6 = scmp.ge.s32.totalorder %s1778_s26, 2  ;;  %s2156_s4 = sld [smem:[#allocation27_spill]] }
  0x18   : > { %p1379_p4 = pneg %p1897_p3  ;;  %s1781_s20 = smov 128  }
  0x19   : > { %s1782_s28 = smov 8   ;;  %s1783_s29 = smov [#allocation8]  }
  0x1a   : > { %p1905_p5 = pnand %p1379_p4, %p66_p1  ;;  %s412_s14 = sshll.u32 %s1783_s29, 4  ;;  %s413_s14 = int_to_ptr.vmem [resolvable:$true] %s412_s14 }
  0x1b   : > { %s387_s30 = sshll.u32 %s2153_s2, 4  ;;  %s2157_s6 = sld [smem:[#allocation28_spill]]  ;;  %s388_s30 = int_to_ptr.hbm [resolvable:$true] %s387_s30 }
  0x1c   : > { %1382 = dma.hbm_to_vmem [thread:$0]  (!%p1905_p5), %s388_s30, 512, %s390_s15, [#allocation6], %s1781_s20, %s1781_s20, %s1782_s28  }
  0x1d   : > { %s410_s19 = sshll.u32 %s2156_s4, 4  ;;  %s2158_s8 = sld [smem:[#allocation29_spill]]  ;;  %s411_s19 = int_to_ptr.hbm [resolvable:$true] %s410_s19 }
  0x1e   : > { %1385 = dma.hbm_to_vmem [thread:$0]  (!%p1905_p5), %s411_s19, 512, %s413_s14, [#allocation9], %s1781_s20, %s1781_s20, %s1782_s28  }
  0x1f   : > { %s1784_s15 = smov [#allocation10]   ;;  %s1785_s2 = smov [#allocation11]  }
  0x20   : > { %s435_s4 = sshll.u32 %s1784_s15, 4  ;;  %s458_s11 = sshll.u32 %s1785_s2, 4  ;;  %s436_s4 = int_to_ptr.vmem [resolvable:$true] %s435_s4  ;;  %s459_s11 = int_to_ptr.vmem [resolvable:$true] %s458_s11 }
  0x21   : > { %s433_s12 = sshll.u32 %s2157_s6, 4  ;;  %s1318_s19 = sadd.s32 4294967294, %s1778_s26   ;;  %s434_s12 = int_to_ptr.hbm [resolvable:$true] %s433_s12 }
  0x22   : > { %1388 = dma.hbm_to_vmem [thread:$0]  (!%p1905_p5), %s434_s12, 512, %s436_s4, [#allocation9], %s1781_s20, %s1781_s20, %s1782_s28  }
  0x23   : > { %s456_s30 = sshll.u32 %s2158_s8, 4  ;;  %s45_s29 = sadd.s32 1, %s1774_s25  ;;  %s457_s30 = int_to_ptr.hbm [resolvable:$true] %s456_s30 }
  0x24   : > { %1391 = dma.hbm_to_vmem [thread:$0]  (!%p1905_p5), %s457_s30, 512, %s459_s11, [#allocation12], %s1781_s20, %s1781_s20, %s1782_s28  }
  0x25   : > { %p47_p7 = scmp.ge.s32.totalorder %s45_s29, 2  ;;  %s52_s14 = sadd.s32 1, %s1766_s23 }
  0x26   : > { %p59_p8 = scmp.ne.s32.totalorder %s1766_s23, %s1762_s22  ;;  %p60_p9 = scmp.eq.s32.totalorder %s1778_s26, 0 }
  0x27   : > { %s2182_s29 = smov (%p47_p7, %s45_s29), 0  ;;  %p65_p11 = scmp.ne.s32.totalorder %s1762_s22, %s1758_s21 }
  0x28   : > { %2159 = sst [smem:[#allocation22_spill]] %s2182_s29  ;;  %p1935_p10 = por %p60_p9, %p59_p8 }
  0x29   : > { %s49_s12 = ssub.s32 %s1774_s25, %s2182_s29  ;;  %p360_p12 = scmp.eq.s32.totalorder %s1889_s27, 1 }
  0x2a   : > { %p50_p13 = scmp.eq.s32.totalorder %s49_s12, 0  ;;  %p1946_p0 = por %p66_p1, %p65_p11 }
  0x2b   : > { %p1950_p2 = por %p360_p12, %p59_p8  ;;  %p366_p4 = scmp.eq.s32.totalorder %s1318_s19, 1 }
  0x2c   : > { %s1955_s28 = scalar_select %p50_p13, %s1766_s23, %s52_s14  }
  0x2d   : > { %s2162_s20 = scalar_select %p1950_p2, 1, 0 }
  0x2e   : > { %2164 = sst [smem:[#allocation24_spill]] %s1955_s28  ;;  %p1957_p5 = por %p366_p4, %p65_p11 }
  0x2f   : > { %2163 = sst [smem:[#allocation23_spill]] %s2162_s20  ;;  %p1407_p7 = scmp.lt.s32.totalorder %s1778_s26, 2 }
  0x30   : > { %s2165_s17 = scalar_select %p1957_p5, 1, 0 }
  0x31   : > { %s481_s18 = sand.u32 1, %s1766_s23   ;;  %s1329_s30 = sshll.u32 %s1774_s25, 3 }
  0x32   : > { %2166 = sst [smem:[#allocation25_spill]] %s2165_s17  ;;  %s1328_s15 = sshll.u32 %s481_s18, 3 }
  0x33   : > { %s489_s12 = scalar_lea.hbm %s2124_s0, %s1329_s30  ;;  %s485_s8 = scalar_lea.vmem [#allocation2], %s1328_s15 }
  0x34   : > { %s491_s6 = sshll.u32 %s489_s12, 4  ;;  %s493_s29 = sshll.u32 %s485_s8, 4  ;;  %s492_s6 = int_to_ptr.hbm [resolvable:$true] %s491_s6  ;;  %s494_s29 = int_to_ptr.vmem [resolvable:$true] %s493_s29 }
  0x35   : > { %p1393_p8 = pnand %p1407_p7, %p1935_p10  ;;  %s500_s19 = sand.u32 1, %s1778_s26  }
  0x36   : > { %s506_s17 = scalar_lea.hbm %s2125_s1, %s1774_s25  ;;  %s482_s21 = scalar_lea.sflag [#allocation3], %s481_s18 }
  0x37   : > { %1395 = dma.hbm_to_vmem [thread:$0]  (!%p1393_p8), %s492_s6, 128, %s494_s29, %s482_s21  }
  0x38   : > { %s508_s23 = sshll.u32 %s506_s17, 4  ;;  %s503_s20 = scalar_lea.vmem [#allocation5], %s481_s18  ;;  %s509_s23 = int_to_ptr.hbm [resolvable:$true] %s508_s23 }
  0x39   : > { %s510_s10 = sshll.u32 %s503_s20, 4  ;;  %s501_s30 = scalar_lea.sflag [#allocation6], %s500_s19  ;;  %s511_s10 = int_to_ptr.vmem [resolvable:$true] %s510_s10 }
  0x3a   : > { %1398 = dma.hbm_to_vmem [thread:$0]  (!%p1393_p8), %s509_s23, 16, %s511_s10, %s501_s30  }
  0x3b   : > { %519 = sbr.rel (%p1897_p3) target bundleno = 1394 (0x572), region = 68  ;;  %s1977_s8 = sand.u32 (!%p1897_p3), 1, %s1762_s22  }
  0x3c   : > { %s1331_s4 = sshll.u32 (!%p1897_p3), %s1977_s8, 3  ;;  %s522_s28 = scalar_lea.sflag (!%p1897_p3), [#allocation3], %s1977_s8 }
  0x3d   : > { %s525_s6 = scalar_lea.vmem (!%p1897_p3), [#allocation2], %s1331_s4 }
  0x40   : > { %1733 = dma.done.wait (%p1946_p0), %s522_s28, 128  }
  0x41   : > { %1735 = vsyncadd (%p1946_p0), %s522_s28, 4294967168  ;;  %s531_s10 = sand.u32 1, %s1889_s27  }
  0x42   : > { %s532_s21 = scalar_lea.sflag [#allocation6], %s531_s10 }
  0x43   : > { %1737 = dma.done.wait (%p1946_p0), %s532_s21, 16  }
  0x44   : > { %1739 = vsyncadd (%p1946_p0), %s532_s21, 4294967280 }
  0x45   : > { %1741 = dma.done.wait (%p66_p1), [#allocation6], 512  }
  0x46   : > { %1743 = vsyncadd (%p66_p1), [#allocation6], 4294966784 }
  0x47   : > { %1745 = dma.done.wait (%p66_p1), [#allocation9], 1024  }
  0x48   : > { %1747 = vsyncadd (%p66_p1), [#allocation9], 4294966272 }
  0x49   : > { %1749 = dma.done.wait (%p66_p1), [#allocation12], 512  }
  0x4a   : > { %1751 = vsyncadd (%p66_p1), [#allocation12], 4294966784  ;;  %v654_v0 = vld [vmem:[#allocation8 + $0x18] sm:$0xff]  ;;  %v653_v1 = vld [vmem:[#allocation8 + $0x10] sm:$0xff]  ;;  %vm627_vm0 = vcmask 261120   ;;  %vm707_vm1 = vcmask 64512  }
  0x4b   : > { %v622_v2 = vld [vmem:[#allocation7 + $0x18] sm:$0xff]  ;;  %671 = vmatpush.msra.mxu1 %v654_v0  ;;  %v621_v3 = vld [vmem:[#allocation7 + $0x10] sm:$0xff]  ;;  %v652_v4 = vld [vmem:[#allocation8 + $0x8] sm:$0xff]  ;;  %s1786_s16 = smov 104   ;;  %s1787_s20 = smov 120  }
  0x4c   : > { %643 = vmatpush.msra.mxu0 %v622_v2  ;;  %v651_v5 = vld [vmem:[#allocation8] sm:$0xff]  ;;  %v620_v6 = vld [vmem:[#allocation7 + $0x8] sm:$0xff]  ;;  %s1788_s17 = smov 112   ;;  %v682_v15 = vld [vmem:[#allocation10 + $0x18] sm:$0xff]  ;;  %s1789_s2 = smov 8  }
  0x4d   : > { %672 = vmatpush.msra.mxu1 %v653_v1  ;;  %v619_v7 = vld [vmem:[#allocation7] sm:$0xff]  ;;  %v2004_v8 = vld [vmem:[%s525_s6] sm:$0xff]  ;;  %699 = vmatpush.msra.mxu2 %v682_v15  ;;  %s1790_s11 = smov 16   ;;  %s1791_s12 = smov 24  }
  0x4e   : > { %644 = vmatpush.msra.mxu0 %v621_v3  ;;  %v1474_v9 = vld [vmem:[%s2129_s5] ss:$0 sm:$0xff]  ;;  %v681_v16 = vld [vmem:[#allocation10 + $0x10] sm:$0xff]  ;;  %v679_v18 = vld [vmem:[#allocation10] sm:$0xff]  ;;  %s2066_s19 = scalar_lea.vmem [#allocation13], %s1331_s4  ;;  %s1354_s4 = sshll.u32 %s1770_s24, 3 }
  0x4f   : > { %673 = vmatpush.msra.mxu1 %v652_v4  ;;  %v1475_v10 = vld [vmem:[%s2127_s3] ss:$0 sm:$0xff]  ;;  %700 = vmatpush.msra.mxu2 %v681_v16  ;;  %s2167_s10 = sld [smem:[#allocation30_spill]]  ;;  %s1135_s24 = sshll.u32 %s2066_s19, 4  ;;  %s1136_s24 = int_to_ptr.vmem [resolvable:$true] %s1135_s24 }
  0x50   : > { %645 = vmatpush.msra.mxu0 %v620_v6  ;;  %v680_v17 = vld [vmem:[#allocation10 + $0x8] sm:$0xff]  ;;  %s2168_s27 = sld [smem:[#allocation32_spill]]  ;;  %s1123_s15 = scalar_lea.sflag [#allocation4], %s1977_s8 }
  0x51   : > { %674 = vmatpush.msra.mxu1 %v651_v5  ;;  %701 = vmatpush.msra.mxu2 %v680_v17  ;;  %v1476_v27 = vld [vmem:[%s2131_s7] ss:$0 sm:$0xff] }
  0x52   : > { %646 = vmatpush.msra.mxu0 %v619_v7  ;;  %1338 = vmatmul.msk.f32.vlgmr.msra.gmra.mxu1 %vm627_vm0, %v2004_v8 }
  0x53   : > { %1337 = vmatmul.msk.f32.vlgmr.msra.gmra.mxu0 %vm627_vm0, %v2004_v8  ;;  %702 = vmatpush.msra.mxu2 %v679_v18 }
  0x54   : > { %1339 = vmatmul.msk.f32.vlgmr.msra.gmra.mxu2 %vm627_vm0, %v2004_v8 }
  0x56   : > { %s1133_s13 = scalar_lea.hbm %s2168_s27, %s1354_s4  ;;  %s1700_s30 = scalar_lea.hbm %s2168_s27, 16 }
  0x57   : > { %s1137_s18 = sshll.u32 %s1133_s13, 4  ;;  %s1138_s18 = int_to_ptr.hbm [resolvable:$true] %s1137_s18 }
  0xcf   : > { %v676_v11 = vpop.f32.mrf.mxu1 }
  0xd0   : > { %v648_v12 = vpop.f32.mrf.mxu0  ;;  %v677_v13 = vadd.f32 %v1474_v9, %v676_v11 }
  0xd1   : > { %v649_v14 = vadd.f32 %v1475_v10, %v648_v12 }
  0xd2   : > { %940 = vrot.lane.b32.xlu2 %v677_v13, %s1786_s16  ;;  %783 = vrot.lane.b32.xlu1 %v677_v13, %s1787_s20 }
  0xd3   : > { %862 = vrot.lane.b32.xlu0 %v677_v13, %s1788_s17  ;;  %1340 = vmatpush.xpose.msk.msra.mxu3 %vm707_vm1, %v677_v13 }
  0xd6   : > { %1341 = vmatmul.msk.f32.vlgmr.msra.gmra.mxu3 %vm707_vm1, %v649_v14 }
  0xd7   : > { %v704_v28 = vpop.f32.mrf.mxu2 }
  0xd8   : > { %v705_v29 = vadd.f32 %v1476_v27, %v704_v28 }
  0xda   : > { %938 = vrot.lane.b32.xlu2 %v649_v14, %s1786_s16  ;;  %781 = vrot.lane.b32.xlu1 %v649_v14, %s1787_s20 }
  0xdb   : > { %860 = vrot.lane.b32.xlu0 %v649_v14, %s1788_s17  ;;  %776 = vmatpush.msrb.mxu3 %v705_v29 }
 0x12c   : > { %v941_v20 = vpop.permute.xlu2 %940 }
 0x134   : > { %v939_v24 = vpop.permute.xlu2 %938 }
 0x144   : > { %v784_v19 = vpop.permute.xlu1 %783 }
 0x145   : > { %v863_v21 = vpop.permute.xlu0 %862  ;;  %1343 = vmatpush.xpose.msk.msrb.mxu0 %vm707_vm1, %v784_v19 }
 0x146   : > { %1346 = vmatpush.xpose.msk.msrb.mxu2 %vm707_vm1, %v863_v21 }
 0x149   : > { %1349 = vmatpush.xpose.msk.msra.mxu0 %vm707_vm1, %v941_v20 }
 0x14c   : > { %v782_v22 = vpop.permute.xlu1 %781 }
 0x14d   : > { %v861_v23 = vpop.permute.xlu0 %860  ;;  %1344 = vmatmul.msk.f32.vlgmr.msrb.gmra.mxu0 %vm707_vm1, %v782_v22 }
 0x14e   : > { %1347 = vmatmul.msk.f32.vlgmr.msrb.gmra.mxu2 %vm707_vm1, %v861_v23 }
 0x155   : > { %1350 = vmatmul.msk.f32.vlgmr.msra.gmra.mxu0 %vm707_vm1, %v939_v24 }
 0x159   : > { %v731_v25 = vpop.f32.mrf.mxu3 }
 0x15a   : > { %v734_v26 = vsel %vm707_vm1, %v731_v25, -inf }
 0x15b   : > { %735 = vmax.xlane.f32.xlu0 %v734_v26 }
 0x1ca   : > { %v806_v30 = vpop.f32.mrf.mxu0 }
 0x1cb   : > { %v809_v31 = vsel %vm707_vm1, %v806_v30, -inf }
 0x1cc   : > { %810 = vmax.xlane.f32.xlu1 %v809_v31 }
 0x1ce   : > { %v736_v32 = vpop.xlane.xlu0 %735 }
 0x1cf   : > { %v737_v33 = vsub.f32 %v731_v25, %v736_v32 }
 0x1d1   : > { %v738_v34 = vmul.f32 1.442695, %v737_v33  ;;  %v885_v35 = vpop.f32.mrf.mxu2 }
 0x1d2   : > { %v888_v36 = vsel %vm707_vm1, %v885_v35, -inf  ;;  %v963_v37 = vpop.f32.mrf.mxu0 }
 0x1d3   : > { %1480 = vpow2.f32 %v738_v34  ;;  %889 = vmax.xlane.f32.xlu2 %v888_v36  ;;  %v966_v39 = vsel %vm707_vm1, %v963_v37, -inf }
 0x1d9   : > { %v1481_v38 = vpop.eup %1480 }
 0x1da   : > { %v740_v40 = vsel %vm707_vm1, %v1481_v38, 0.0 }
 0x1db   : > { %967 = vmax.xlane.f32.xlu2 %v966_v39  ;;  %741 = vadd.xlane.f32.xlu0 %v740_v40 }
 0x23f   : > { %v811_v41 = vpop.xlane.xlu1 %810 }
 0x240   : > { %v812_v42 = vsub.f32 %v806_v30, %v811_v41 }
 0x242   : > { %v813_v43 = vmul.f32 1.442695, %v812_v42 }
 0x244   : > { %1482 = vpow2.f32 %v813_v43 }
 0x246   : > { %v890_v44 = vpop.xlane.xlu2 %889 }
 0x247   : > { %v891_v45 = vsub.f32 %v885_v35, %v890_v44 }
 0x249   : > { %v892_v46 = vmul.f32 1.442695, %v891_v45 }
 0x24a   : > { %v2040_v47 = vpop.eup %1482 }
 0x24b   : > { %1484 = vpow2.f32 %v892_v46  ;;  %v815_v48 = vsel %vm707_vm1, %v2040_v47, 0.0 }
 0x24c   : > { %816 = vadd.xlane.f32.xlu1 %v815_v48  ;;  %v1036_v48 = vld [vmem:[#allocation11 + $0x18] sm:$0xff] }
 0x24d   : > { %1052 = vmatpush.msra.mxu2 %v1036_v48 }
 0x24e   : > { %v968_v49 = vpop.xlane.xlu2 %967  ;;  %v742_v50 = vpop.xlane.xlu0 %741 }
 0x24f   : > { %v969_v51 = vsub.f32 %v963_v37, %v968_v49  ;;  %1486 = vrcp.f32 %v742_v50  ;;  %v754_v59 = vand.u32 2147483648, %v742_v50  ;;  %v752_v61 = vand.u32 2147483647, %v742_v50  ;;  %v1035_v49 = vld [vmem:[#allocation11 + $0x10] sm:$0xff] }
 0x250   : > { %vm748_vm3 = vweird.f32 %v742_v50  ;;  %1053 = vmatpush.msra.mxu2 %v1035_v49 }
 0x251   : > { %v2044_v52 = vpop.eup %1484  ;;  %v970_v53 = vmul.f32 1.442695, %v969_v51  ;;  %v755_v0 = vor.u32 1.1754944e-38, %v754_v59  ;;  %vm753_vm5 = vcmp.eq.f32.partialorder %v752_v61, 8.507059e+37  ;;  %v1033_v51 = vld [vmem:[#allocation11] sm:$0xff] }
 0x252   : > { %v894_v54 = vsel %vm707_vm1, %v2044_v52, 0.0  ;;  %v1477_v59 = vld [vmem:[%s2133_s9] ss:$0 sm:$0xff] }
 0x253   : > { %1488 = vpow2.f32 %v970_v53  ;;  %895 = vadd.xlane.f32.xlu2 %v894_v54 }
 0x255   : > { %v1487_v55 = vpop.eup %1486 }
 0x256   : > { %v744_v56 = vmul.f32 %v1487_v55, %v742_v50  ;;  %vm749_vm2 = vweird.f32 %v1487_v55  ;;  %v1034_v50 = vld [vmem:[#allocation11 + $0x8] sm:$0xff] }
 0x257   : > { %vm750_vm4 = vmor %vm748_vm3, %vm749_vm2  ;;  %1054 = vmatpush.msra.mxu2 %v1034_v50 }
 0x258   : > { %v745_v57 = vsub.f32 1.0, %v744_v56 }
 0x259   : > { %v2048_v58 = vpop.eup %1488  ;;  %1055 = vmatpush.msra.mxu2 %v1033_v51 }
 0x25a   : > { %v746_v60 = vmul.f32 %v1487_v55, %v745_v57  ;;  %v972_v62 = vsel %vm707_vm1, %v2048_v58, 0.0 }
 0x25b   : > { %973 = vadd.xlane.f32.xlu0 %v972_v62 }
 0x25c   : > { %v747_v63 = vadd.f32 %v1487_v55, %v746_v60 }
 0x25e   : > { %v751_v1 = vsel %vm750_vm4, %v1487_v55, %v747_v63  ;;  %vm1029_vm4 = vcmask 130048  }
 0x25f   : > { %v756_v2 = vsel %vm753_vm5, %v755_v0, %v751_v1  ;;  %vm1031_vm5 = vcmask 195584   ;;  %v1792_v0 = vmov 32.0  }
 0x260   : > { %v757_v3 = vmul.f32 %v1481_v38, %v756_v2 }
 0x262   : > { %1342 = vmatmul.msk.f32.vlgmr.msrb.gmra.mxu3 %vm707_vm1, %v757_v3 }
 0x265   : > { %834 = vrot.lane.b32.xlu1 %v705_v29, %s1787_s20 }
 0x26b   : > { %912 = vrot.lane.b32.xlu2 %v705_v29, %s1788_s17  ;;  %s2170_s17 = sld [smem:[#allocation31_spill]] }
 0x26f   : > { %990 = vrot.lane.b32.xlu0 %v705_v29, %s1786_s16 }
 0x2bf   : > { %v817_v4 = vpop.xlane.xlu1 %816 }
 0x2c0   : > { %1490 = vrcp.f32 %v817_v4  ;;  %v829_v13 = vand.u32 2147483648, %v817_v4  ;;  %vm823_vm7 = vweird.f32 %v817_v4  ;;  %v827_v17 = vand.u32 2147483647, %v817_v4 }
 0x2c2   : > { %v830_v21 = vor.u32 1.1754944e-38, %v829_v13  ;;  %vm828_vm10 = vcmp.eq.f32.partialorder %v827_v17, 8.507059e+37 }
 0x2c6   : > { %v1491_v5 = vpop.eup %1490  ;;  %v896_v6 = vpop.xlane.xlu2 %895 }
 0x2c7   : > { %v819_v7 = vmul.f32 %v1491_v5, %v817_v4  ;;  %1492 = vrcp.f32 %v896_v6  ;;  %vm824_vm6 = vweird.f32 %v1491_v5  ;;  %v908_v19 = vand.u32 2147483648, %v896_v6 }
 0x2c8   : > { %vm825_vm8 = vmor %vm823_vm7, %vm824_vm6  ;;  %v906_v23 = vand.u32 2147483647, %v896_v6  ;;  %vm902_vm11 = vweird.f32 %v896_v6 }
 0x2c9   : > { %v820_v9 = vsub.f32 1.0, %v819_v7  ;;  %v909_v27 = vor.u32 1.1754944e-38, %v908_v19 }
 0x2ca   : > { %vm907_vm13 = vcmp.eq.f32.partialorder %v906_v23, 8.507059e+37  ;;  %v1479_v23 = vld [vmem:[%s2170_s17] ss:$0 sm:$0xff] }
 0x2cb   : > { %v821_v10 = vmul.f32 %v1491_v5, %v820_v9 }
 0x2cd   : > { %v1493_v11 = vpop.eup %1492  ;;  %v822_v12 = vadd.f32 %v1491_v5, %v821_v10 }
 0x2ce   : > { %v898_v14 = vmul.f32 %v1493_v11, %v896_v6  ;;  %v913_v15 = vpop.permute.xlu2 %912  ;;  %v974_v16 = vpop.xlane.xlu0 %973  ;;  %vm903_vm9 = vweird.f32 %v1493_v11 }
 0x2cf   : > { %1494 = vrcp.f32 %v974_v16  ;;  %933 = vmatpush.msra.mxu3 %v913_v15  ;;  %v826_v20 = vsel %vm825_vm8, %v1491_v5, %v822_v12  ;;  %vm904_vm12 = vmor %vm902_vm11, %vm903_vm9  ;;  %v986_v35 = vand.u32 2147483648, %v974_v16  ;;  %v984_v37 = vand.u32 2147483647, %v974_v16 }
 0x2d0   : > { %v899_v18 = vsub.f32 1.0, %v898_v14  ;;  %v831_v25 = vsel %vm828_vm10, %v830_v21, %v826_v20  ;;  %vm980_vm15 = vweird.f32 %v974_v16  ;;  %1496 = vrcp.f32 %v1792_v0  ;;  %v1478_v21 = vld [vmem:[%s2167_s10] ss:$0 sm:$0xff] }
 0x2d1   : > { %v832_v32 = vmul.f32 %v2040_v47, %v831_v25  ;;  %v987_v39 = vor.u32 1.1754944e-38, %v986_v35  ;;  %vm985_vm3 = vcmp.eq.f32.partialorder %v984_v37, 8.507059e+37 }
 0x2d2   : > { %v900_v22 = vmul.f32 %v1493_v11, %v899_v18 }
 0x2d4   : > { %v901_v24 = vadd.f32 %v1493_v11, %v900_v22 }
 0x2d5   : > { %v1495_v26 = vpop.eup %1494 }
 0x2d6   : > { %v905_v28 = vsel %vm904_vm12, %v1493_v11, %v901_v24  ;;  %v976_v29 = vmul.f32 %v1495_v26, %v974_v16  ;;  %vm981_vm14 = vweird.f32 %v1495_v26  ;;  %v1497_v1 = vpop.eup %1496 }
 0x2d7   : > { %v910_v30 = vsel %vm907_vm13, %v909_v27, %v905_v28  ;;  %v835_v31 = vpop.permute.xlu1 %834  ;;  %vm982_vm2 = vmor %vm980_vm15, %vm981_vm14  ;;  %v1086_v2 = vmul.f32 32.0, %v1497_v1 }
 0x2d8   : > { %v977_v33 = vsub.f32 1.0, %v976_v29  ;;  %855 = vmatpush.msrb.mxu1 %v835_v31  ;;  %v911_v34 = vmul.f32 %v2044_v52, %v910_v30 }
 0x2d9   : > { %1345 = vmatmul.msk.f32.vlgmr.msrb.gmra.mxu1 %vm707_vm1, %v832_v32  ;;  %v1087_v3 = vsub.f32 1.0, %v1086_v2 }
 0x2da   : > { %v978_v36 = vmul.f32 %v1495_v26, %v977_v33  ;;  %1348 = vmatmul.msk.f32.vlgmr.msra.gmra.mxu3 %vm707_vm1, %v911_v34 }
 0x2db   : > { %v1088_v4 = vmul.f32 %v1497_v1, %v1087_v3 }
 0x2dc   : > { %v979_v38 = vadd.f32 %v1495_v26, %v978_v36 }
 0x2dd   : > { %v1089_v5 = vadd.f32 %v1497_v1, %v1088_v4 }
 0x2de   : > { %v983_v40 = vsel %vm982_vm2, %v1495_v26, %v979_v38 }
 0x2df   : > { %v988_v41 = vsel %vm985_vm3, %v987_v39, %v983_v40 }
 0x2e0   : > { %v989_v42 = vmul.f32 %v2048_v58, %v988_v41 }
 0x2e1   : > { %v991_v43 = vpop.permute.xlu0 %990 }
 0x2e2   : > { %1011 = vmatpush.msra.mxu1 %v991_v43 }
 0x2e3   : > { %1351 = vmatmul.msk.f32.vlgmr.msra.gmra.mxu1 %vm707_vm1, %v989_v42 }
 0x2e5   : > { %v778_v44 = vpop.f32.mrf.mxu3 }
 0x356   : > { %v857_v45 = vpop.f32.mrf.mxu1 }
 0x357   : > { %1017 = vrot.lane.b32.xlu1 %v857_v45, %s1789_s2  ;;  %s1694_s2 = sshra.s32 %s1138_s18, 4  ;;  %s1695_s2 = int_to_ptr.hbm [resolvable:$true] %s1694_s2 }
 0x358   : > { %p1701_p10 = scmp.lt.s32.totalorder %s1695_s2, %s2168_s27 }
 0x35d   : > { %v935_v46 = vpop.f32.mrf.mxu3 }
 0x35e   : > { %1021 = vrot.lane.b32.xlu0 %v935_v46, %s1790_s11  ;;  %s1696_s11 = scalar_lea.hbm %s1695_s2, 8 }
 0x35f   : > { %p1697_p1 = scmp.ne.s32.totalorder %s1695_s2, %s1696_s11  ;;  %p1702_p11 = scmp.lt.s32.totalorder %s1700_s30, %s1696_s11 }
 0x360   : > { %v1013_v47 = vpop.f32.mrf.mxu1 }
 0x361   : > { %1025 = vrot.lane.b32.xlu2 %v1013_v47, %s1791_s12  ;;  %p1698_p3 = pnand %p1697_p1, %p1950_p2  ;;  %p1703_p12 = por %p1702_p11, %p1701_p10 }
 0x363   : > { %p1699_p9 = pneg %p1698_p3 }
 0x365   : > { %p1704_p13 = pnand %p1703_p12, %p1699_p9 }
 0x3bb   : > { %v1026_v55 = vpop.permute.xlu2 %1025 }
 0x3c9   : > { %v1018_v52 = vpop.permute.xlu1 %1017 }
 0x3ca   : > { %v1028_v53 = vsel %vm707_vm1, %v778_v44, %v1018_v52  ;;  %vm1090_vm1 = vweird.f32 %v1497_v1 }
 0x3cb   : > { %v1091_v6 = vsel %vm1090_vm1, %v1497_v1, %v1089_v5 }
 0x3d0   : > { %v1022_v54 = vpop.permute.xlu0 %1021 }
 0x3d1   : > { %v1030_v56 = vsel %vm1029_vm4, %v1028_v53, %v1022_v54 }
 0x3d2   : > { %v1032_v57 = vsel %vm1031_vm5, %v1030_v56, %v1026_v55 }
 0x3d3   : > { %1352 = vmatmul.msk.f32.vlgmr.msra.gmra.mxu2 %vm627_vm0, %v1032_v57 }
 0x456   : > { %v1057_v58 = vpop.f32.mrf.mxu2 }
 0x457   : > { %1064 = vst.msk [vmem:[%s2066_s19] sm:$0xff] %vm627_vm0, %v1057_v58 }
 0x45e   : > { %v1075_v60 = vld [vmem:[%s2066_s19] sm:$0xff] }
 0x45f   : > { %v1080_v61 = vadd.f32 %v1477_v59, %v1075_v60 }
 0x461   : > { %v1081_v62 = vadd.f32 %v1080_v61, %v2004_v8 }
 0x463   : > { %v1082_v63 = vsel %vm627_vm0, %v1081_v62, 0.0 }
 0x464   : > { %1083 = vadd.xlane.f32.xlu1 %v1082_v63 }
 0x4d7   : > { %v1084_v7 = vpop.xlane.xlu1 %1083 }
 0x4d8   : > { %v1092_v9 = vmul.f32 %v1091_v6, %v1084_v7 }
 0x4da   : > { %v1093_v10 = vsub.f32 %v1081_v62, %v1092_v9 }
 0x4dc   : > { %v1094_v11 = vmul.f32 %v1093_v10, %v1093_v10 }
 0x4de   : > { %v1095_v12 = vsel %vm627_vm0, %v1094_v11, 0.0 }
 0x4df   : > { %1096 = vadd.xlane.f32.xlu0 %v1095_v12 }
 0x552   : > { %v1097_v8 = vpop.xlane.xlu0 %1096 }
 0x553   : > { %v1098_v13 = vmul.f32 %v1097_v8, %v1091_v6 }
 0x555   : > { %v1099_v14 = vadd.f32 1e-05, %v1098_v13 }
 0x557   : > { %1498 = vrsqrt.f32 %v1099_v14  ;;  %vm1106_vm7 = vweird.f32 %v1099_v14 }
 0x55d   : > { %v1499_v15 = vpop.eup %1498 }
 0x55e   : > { %v1101_v16 = vmul.f32 %v1499_v15, %v1099_v14  ;;  %vm1107_vm6 = vweird.f32 %v1499_v15 }
 0x55f   : > { %vm1108_vm8 = vmor %vm1106_vm7, %vm1107_vm6 }
 0x560   : > { %v1102_v17 = vmul.f32 %v1499_v15, %v1101_v16 }
 0x562   : > { %v1103_v18 = vmul.f32 0.5, %v1102_v17 }
 0x564   : > { %v1104_v19 = vsub.f32 1.5, %v1103_v18 }
 0x566   : > { %v1105_v20 = vmul.f32 %v1499_v15, %v1104_v19 }
 0x568   : > { %v1109_v22 = vsel %vm1108_vm8, %v1499_v15, %v1105_v20 }
 0x569   : > { %v1110_v24 = vmul.f32 %v1109_v22, %v1093_v10 }
 0x56b   : > { %v1115_v25 = vmul.f32 %v1478_v21, %v1110_v24 }
 0x56d   : > { %v1120_v26 = vadd.f32 %v1479_v23, %v1115_v25 }
 0x56f   : > { %1121 = vst.msk [vmem:[%s2066_s19] sm:$0xff] %vm627_vm0, %v1120_v26 }
 0x570   : > { %1707 = shalt.err (!%p1704_p13)
}
 0x571   : > { %1377 = dma.vmem_to_hbm [thread:$0]  (%p1950_p2), %s1136_s24, 128, %s1138_s18, %s1123_s15  }
 0x572 PF: > { %s2171_s8 = sld [smem:[#allocation20_spill]]  ;;  %p1400_p0 = pnand %p1327_p6, %p1957_p5 }
 0x574   : > { %p1401_p4 = pneg %p1400_p0 }
 0x578   : > { %s1149_s6 = sand.u32 1, %s2171_s8  }
 0x579   : > { %s1150_s10 = scalar_lea.sflag [#allocation4], %s1149_s6 }
 0x57a   : > { %1753 = dma.done.wait (%p1401_p4), %s1150_s10, 128  }
 0x57b   : > { %1755 = vsyncadd (%p1401_p4), %s1150_s10, 4294967168  ;;  %s33_s26 = sadd.s32 1, %s1778_s26   ;;  %s2173_s23 = sld [smem:[#allocation21_spill]] }
 0x57c   : > { %p30_p7 = scmp.ge.s32.totalorder %s33_s26, 4   ;;  %s2174_s13 = sld [smem:[#allocation24_spill]] }
 0x57d   : > { %s2175_s29 = sld [smem:[#allocation22_spill]]  ;;  %s2176_s21 = smov %s1762_s22 }
 0x57e   : > { %s2179_s24 = smov %s1774_s25 }
 0x57f   :  { %32 = sbr.rel (!%p30_p7) target bundleno = 18 (0x12), region = 167 }
 0x581   : > { %s2177_s22 = smov %s2173_s23 }
 0x582   : > { %s2178_s23 = smov %s2174_s13 }
 0x583   : > { %s2180_s25 = smov %s2175_s29 }
 0x584   :  { %1156 = vsyncpa [#allocation3], 1 }
 0x585   :  { %1158 = vsyncpa [#allocation3 + $0x1], 1 }
 0x586   :  { %1159 = vsyncpa [#allocation6], 1 }
 0x587   :  { %1161 = vsyncpa [#allocation6 + $0x1], 1 }
 0x588   :  { %1162 = vsyncpa [#allocation9], 1 }
 0x589   :  { %1163 = vsyncpa [#allocation12], 1 }
 0x58a   :  { %1164 = vsyncpa [#allocation4], 1 }
 0x58b   :  { %1166 = vsyncpa [#allocation4 + $0x1], 1 }

</bundles_post_ra>
